<compile_context>
chip_gen: v7x
topology: tpu7x:2x2x1
jax: 0.10.0
libtpu: 0.0.40
codegen_flags: <defaults>
</compile_context>

<pallas_src>
import math
import functools

import jax
import jax.numpy as jnp
from jax import lax
from jax.experimental import pallas as pl
from jax.experimental.pallas import tpu as pltpu

EPS = 1e-5  # nn.GroupNorm default

# Whether constant operands may be single-buffered via pl.Buffered(1); demoted at
# runtime if this jax version rejects it (see basic_block()).
_SINGLE_BUFFER_CONSTS = hasattr(pl, "Buffered")


@functools.lru_cache(maxsize=None)
def _pltpu_roll_matches_jnp_roll() -> bool:
    """One-time probe of pltpu.roll's rotation sign convention on this backend.

    The conv tap offsets depend on whether pltpu.roll(x, s)[i] == x[(i - s) % N]
    (jnp.roll convention) or x[(i + s) % N]; probe once and pick static shifts.
    """
    def probe(x_ref, o_ref):
        o_ref[...] = pltpu.roll(x_ref[...], 1, axis=1)

    x = jnp.tile(jnp.arange(128, dtype=jnp.float32)[None, :], (8, 1))
    r = pl.pallas_call(
        probe, out_shape=jax.ShapeDtypeStruct((8, 128), jnp.float32))(x)
    return bool(r[0, 1] == 0.0)   # jnp.roll(x,1)[..,1] == x[..,0] == 0


def basic_block_kernel(x_ref, w1_ref, w2_ref, g1_ref, b1_ref, g2_ref, b2_ref,
                       p_ref, mask_ref, o_ref, *,
                       n_per_group, tap_shifts, conv_dtype, images_per_step):
    """Fused BasicBlock on `images_per_step` images.

    x_ref    : (K, C, Np)  zero-padded flattened images (channels on sublanes,
                           flattened padded spatial on lanes, Np % 128 == 0)
    w*_ref   : (9, C, C)   conv weights, tap-major, (out, in) per tap, conv_dtype
    g*/b*_ref: (C, 1)      GroupNorm affine params (f32)
    p_ref    : (C, C)      group-membership matrix (1 if same group), f32
    mask_ref : (1, Np)     1.0 on the H*W interior positions, 0 on pad ring/tail
    o_ref    : (K, C, Np)  output in the same padded flattened layout
    """
    C = x_ref.shape[1]
    Np = x_ref.shape[2]
    inv_n = 1.0 / n_per_group

    # Hoisted once per grid step (JAX does not CSE broadcast_in_dim / iota).
    maskC = jnp.broadcast_to(mask_ref[...], (C, Np))          # (C, Np)
    lane2 = lax.broadcasted_iota(jnp.int32, (C, 2), 1)        # for stat pack/unpack
    p = p_ref[...]
    g1 = g1_ref[...]; b1 = b1_ref[...]
    g2 = g2_ref[...]; b2 = b2_ref[...]

    def conv3x3(a, w_ref):
        # 3x3 / stride 1 / pad 1: each tap is a static lane rotation (XLU) of the
        # flattened padded grid; 9 accumulating (C,C)@(C,Np) MXU pushes, bf16
        # operands, f32 accumulation.  Border garbage lands only in the pad ring,
        # which is masked/discarded downstream.
        acc = None
        for t, s in enumerate(tap_shifts):
            tap = a if s == 0 else pltpu.roll(a, s, axis=1)
            part = jnp.dot(w_ref[t], tap.astype(conv_dtype),
                           preferred_element_type=jnp.float32)
            acc = part if acc is None else acc + part
        return acc

    def group_norm(a, gamma, beta):
        am = a * maskC                                        # stats on valid lanes
        ch_sum = jnp.sum(am, axis=1, keepdims=True)           # (C, 1)
        ch_sq = jnp.sum(am * a, axis=1, keepdims=True)        # (C, 1)
        # Fused group pooling: one (C,C)@(C,2) MXU push for both statistics.
        stats = jnp.where(lane2 == 0, ch_sum, ch_sq)          # (C, 2)
        pooled = jnp.dot(p, stats, preferred_element_type=jnp.float32) * inv_n
        mean = jnp.sum(jnp.where(lane2 == 0, pooled, 0.0), axis=1, keepdims=True)
        ex2 = jnp.sum(jnp.where(lane2 == 1, pooled, 0.0), axis=1, keepdims=True)
        var = jnp.maximum(ex2 - mean * mean, 0.0)              # guard cancellation
        inv = lax.rsqrt(var + EPS)
        return (a - mean) * (inv * gamma) + beta

    # Static unroll over the images packed into this grid step (small K); at
    # production scale this would be an H-row-block grid axis instead.
    for k in range(images_per_step):
        x = x_ref[k]                                           # (C, Np) f32
        # conv1 -> GN1 -> ReLU ; re-mask so conv2 sees zero padding on the ring.
        h1 = jnp.maximum(group_norm(conv3x3(x, w1_ref), g1, b1), 0.0) * maskC
        # conv2 -> GN2 -> +identity residual -> ReLU.  Pad positions hold junk but
        # are never read back by the wrapper.
        y2 = group_norm(conv3x3(h1, w2_ref), g2, b2)
        o_ref[k] = jnp.maximum(y2 + x, 0.0)


def basic_block(x_nchw, w1, w2, g1, b1, g2, b2, ngroups, *,
                conv_dtype=jnp.bfloat16, images_per_step=None):
    """x_nchw: (B, C, H, W); w1/w2: (Cout, Cin, 3, 3) torch layout; g*/b*: (C,)."""
    global _SINGLE_BUFFER_CONSTS

    B, Cin, H, W = x_nchw.shape
    C = int(w1.shape[0])
    assert Cin == C, "downsample=None requires inplanes == planes, stride == 1"
    G = int(ngroups)
    assert C % G == 0

    if images_per_step is None:
        # Largest divisor of B that still leaves a grid extent >= 2 (v7x megacore).
        images_per_step = 1
        for k in range(min(B, 8), 0, -1):
            if B % k == 0 and B // k >= 2:
                images_per_step = k
                break
    K = int(images_per_step)
    assert B % K == 0

    Hp, Wp = H + 2, W + 2
    nflat = Hp * Wp
    Np = ((nflat + 127) // 128) * 128        # lane-dense: multiple of 128

    # --- layout glue (wrapper-side, plain XLA) ---
    x32 = x_nchw.astype(jnp.float32)
    xpad = jnp.pad(x32, ((0, 0), (0, 0), (1, 1), (1, 1)))           # (B,C,Hp,Wp)
    xf = jnp.pad(xpad.reshape(B, C, nflat), ((0, 0), (0, 0), (0, Np - nflat)))

    def weight_taps(w):   # (Co,Ci,3,3) -> (9, Co, Ci), tap-major
        wt = jnp.transpose(w.astype(jnp.float32), (2, 3, 0, 1)).reshape(9, C, C)
        return wt.astype(conv_dtype)

    w1t, w2t = weight_taps(w1), weight_taps(w2)
    g1c = g1.reshape(C, 1).astype(jnp.float32)
    b1c = b1.reshape(C, 1).astype(jnp.float32)
    g2c = g2.reshape(C, 1).astype(jnp.float32)
    b2c = b2.reshape(C, 1).astype(jnp.float32)

    gid = jnp.arange(C) // (C // G)
    p_mat = (gid[:, None] == gid[None, :]).astype(jnp.float32)      # (C, C)

    hh = jnp.arange(nflat) // Wp
    ww = jnp.arange(nflat) % Wp
    valid = ((hh >= 1) & (hh <= H) & (ww >= 1) & (ww <= W)).astype(jnp.float32)
    mask = jnp.pad(valid, (0, Np - nflat)).reshape(1, Np)

    # Static lane-shift amounts for the 9 taps (kh-major, matching the weight order).
    jnp_conv = _pltpu_roll_matches_jnp_roll()
    offs = tuple((kh - 1) * Wp + (kw - 1) for kh in range(3) for kw in range(3))
    tap_shifts = tuple(((-o) % Np) if jnp_conv else (o % Np) for o in offs)

    kernel = functools.partial(
        basic_block_kernel,
        n_per_group=float(H * W * (C // G)),
        tap_shifts=tap_shifts,
        conv_dtype=conv_dtype,
        images_per_step=K)

    def build_call(single_buffer_consts):
        def const_spec(shape):
            nd = len(shape)
            index_map = lambda b, _nd=nd: (0,) * _nd
            if single_buffer_consts and hasattr(pl, "Buffered"):
                # Constant blocks: single-buffer to halve their VMEM footprint.
                return pl.BlockSpec(shape, index_map, pipeline_mode=pl.Buffered(1))
            return pl.BlockSpec(shape, index_map)

        in_specs = [
            pl.BlockSpec((K, C, Np), lambda b: (b, 0, 0)),   # x (K images per step)
            const_spec((9, C, C)),                           # conv1 weight taps
            const_spec((9, C, C)),                           # conv2 weight taps
            const_spec((C, 1)),                              # gn1 gamma
            const_spec((C, 1)),                              # gn1 beta
            const_spec((C, 1)),                              # gn2 gamma
            const_spec((C, 1)),                              # gn2 beta
            const_spec((C, C)),                              # group membership
            const_spec((1, Np)),                             # valid-position mask
        ]
        return pl.pallas_call(
            kernel,
            out_shape=jax.ShapeDtypeStruct((B, C, Np), jnp.float32),
            grid=(B // K,),
            in_specs=in_specs,
            out_specs=pl.BlockSpec((K, C, Np), lambda b: (b, 0, 0)),
            compiler_params=pltpu.CompilerParams(
                dimension_semantics=("parallel",),            # megacore over batch
                vmem_limit_bytes=48 * 1024 * 1024),           # headroom for v7x 64MiB
        )

    args = (xf, w1t, w2t, g1c, b1c, g2c, b2c, p_mat, mask)
    if _SINGLE_BUFFER_CONSTS:
        try:
            out_flat = build_call(True)(*args)
        except Exception:
            # This jax/Mosaic version rejects pl.Buffered(1): fall back to the
            # default (double-buffered) constant blocks.  Kernel body is identical.
            _SINGLE_BUFFER_CONSTS = False
            out_flat = build_call(False)(*args)
    else:
        out_flat = build_call(False)(*args)

    # Un-flatten: drop the lane tail and the 1-pixel pad ring -> NCHW.
    out = out_flat[:, :, :nflat].reshape(B, C, Hp, Wp)[:, :, 1:1 + H, 1:1 + W]
    return out


# ----------------------- pure-JAX reference (for verification) ----------------------
def ref_basic_block(x, w1, w2, g1, b1, g2, b2, G):
    def conv(x, w):
        return lax.conv_general_dilated(
            x, w, window_strides=(1, 1), padding=((1, 1), (1, 1)),
            dimension_numbers=("NCHW", "OIHW", "NCHW"))

    def gn(x, gamma, beta):
        B, C, H, W = x.shape
        xr = x.reshape(B, G, -1)
        mean = xr.mean(axis=2, keepdims=True)
        var = ((xr - mean) ** 2).mean(axis=2, keepdims=True)
        xn = ((xr - mean) / jnp.sqrt(var + EPS)).reshape(B, C, H, W)
        return xn * gamma.reshape(1, C, 1, 1) + beta.reshape(1, C, 1, 1)

    out = jax.nn.relu(gn(conv(x, w1), g1, b1))
    out = gn(conv(out, w2), g2, b2)
    return jax.nn.relu(out + x)


if __name__ == "__main__":
    B, C, H, W = 2, 8, 16, 16
    NGROUPS = 4

    key = jax.random.PRNGKey(0)
    kx, kw1, kw2, kx4 = jax.random.split(key, 4)

    x = jax.random.normal(kx, (B, C, H, W), jnp.float32)
    std = math.sqrt(2.0 / (C * 9))  # kaiming-like deterministic init
    w1 = jax.random.normal(kw1, (C, C, 3, 3), jnp.float32) * std
    w2 = jax.random.normal(kw2, (C, C, 3, 3), jnp.float32) * std

    # gn_init(bn1) -> gamma=1, beta=0 ; gn_init(bn2, zero_init=True) -> gamma=0, beta=0
    g1 = jnp.ones((C,), jnp.float32)
    b1 = jnp.zeros((C,), jnp.float32)
    g2 = jnp.zeros((C,), jnp.float32)
    b2 = jnp.zeros((C,), jnp.float32)
    g2_nz = jnp.ones((C,), jnp.float32)   # exercise the full GN2 path too

    # 1) Exact-parity path (f32 MXU operands) against the reference, tight tol.
    out = basic_block(x, w1, w2, g1, b1, g2, b2, NGROUPS, conv_dtype=jnp.float32)
    jax.block_until_ready(out)
    ref = ref_basic_block(x, w1, w2, g1, b1, g2, b2, NGROUPS)
    assert jnp.allclose(out, ref, atol=1e-4, rtol=1e-4), float(
        jnp.max(jnp.abs(out - ref)))

    out_nz = basic_block(x, w1, w2, g1, b1, g2_nz, b2, NGROUPS,
                         conv_dtype=jnp.float32)
    jax.block_until_ready(out_nz)
    ref_nz = ref_basic_block(x, w1, w2, g1, b1, g2_nz, b2, NGROUPS)
    assert jnp.allclose(out_nz, ref_nz, atol=1e-4, rtol=1e-4), float(
        jnp.max(jnp.abs(out_nz - ref_nz)))

    # 2) Default bf16-MXU path (per perf review); looser tolerance.
    out_bf = basic_block(x, w1, w2, g1, b1, g2_nz, b2, NGROUPS)
    jax.block_until_ready(out_bf)
    assert jnp.allclose(out_bf, ref_nz, atol=5e-2, rtol=5e-2), float(
        jnp.max(jnp.abs(out_bf - ref_nz)))

    # 3) Multiple images per grid step (B=4 -> 2 images/step, grid extent stays 2).
    x4 = jax.random.normal(kx4, (4, C, H, W), jnp.float32)
    out4 = basic_block(x4, w1, w2, g1, b1, g2_nz, b2, NGROUPS)
    jax.block_until_ready(out4)
    ref4 = ref_basic_block(x4, w1, w2, g1, b1, g2_nz, b2, NGROUPS)
    assert jnp.allclose(out4, ref4, atol=5e-2, rtol=5e-2), float(
        jnp.max(jnp.abs(out4 - ref4)))

    print("KERNEL_OK")
</pallas_src>

<mosaic_0001>
module attributes {stable_mosaic.version = 11 : i64} {
  func.func @probe(%arg0: memref<8x128xf32, #tpu.memory_space<vmem>>, %arg1: memref<8x128xf32, #tpu.memory_space<vmem>>) attributes {dimension_semantics = [], scalar_prefetch = 0 : i64, scratch_operands = 0 : i64, tpu.core_type = #tpu.core_type<tc>} {
    %c0 = arith.constant 0 : index
    %c0_0 = arith.constant 0 : index
    %0 = vector.load %arg0[%c0, %c0_0] : memref<8x128xf32, #tpu.memory_space<vmem>>, vector<8x128xf32>
    %c1_i32 = arith.constant 1 : i32
    %1 = tpu.dynamic_rotate %0 by %c1_i32 dim 1 : vector<8x128xf32>, i32 -> vector<8x128xf32>
    %c0_1 = arith.constant 0 : index
    %c0_2 = arith.constant 0 : index
    %2 = vector.load %arg1[%c0_1, %c0_2] : memref<8x128xf32, #tpu.memory_space<vmem>>, vector<8x128xf32>
    tpu.vector_store %arg1[%c0_1, %c0_2], %1 {strides = array<i32>} : memref<8x128xf32, #tpu.memory_space<vmem>>, vector<8x128xf32>,
    return
  }
}

</mosaic_0001>

<bundles_post_ra>
// kernel: tpu_custom_call.1
= control target key start
LH: loop header
LB: loop body
LE: loop exit
PB: predicated region body
PF: predicated region fallthrough
CT: control target
= control target key end

     0   :  { %6 = vsyncpa [#allocation3], 0  ;;  %s128_s0 = inlined_call_operand.hbm [shape: f32[8,128], index: 0, kind: input, shape index: {}]   ;;  %s129_s1 = inlined_call_operand.hbm [shape: f32[8,128], index: 1, kind: output, shape index: {}]  }
   0x1   :  { %7 = vsyncpa [#allocation4], 0  ;;  %s91_s6 = smov [#allocation2]   ;;  %s43_s10 = scalar_lea.hbm %s128_s0, 128 }
   0x2   :  { %s14_s7 = sshll.u32 %s91_s6, 4  ;;  %p44_p0 = scmp.ne.s32.totalorder %s128_s0, %s43_s10  ;;  %s15_s7 = int_to_ptr.vmem [resolvable:$true] %s14_s7 }
   0x3   :  { %p47_p1 = scmp.lt.u32.totalorder %s43_s10, %s128_s0 }
   0x5   :  { %p49_p2 = pnand %p47_p1, %p44_p0 }
   0x7   :  { %52 = shalt.err (!%p49_p2)
}
   0x8   :  { %s53_s15 = scalar_lea.vmem %s15_s7, 128  ;;  %p58_p4 = scmp.lt.s32.totalorder %s15_s7, %s15_s7 }
   0x9   :  { %p54_p3 = scmp.ne.s32.totalorder %s15_s7, %s53_s15  ;;  %p59_p5 = scmp.lt.s32.totalorder %s53_s15, %s53_s15 }
   0xb   :  { %p60_p6 = por %p59_p5, %p58_p4 }
   0xd   :  { %p61_p7 = pnand %p60_p6, %p54_p3 }
   0xf   :  { %64 = shalt.err (!%p61_p7)
}
  0x10   :  { %17 = dma.hbm_to_vmem [thread:$0]  %s128_s0, 128, %s15_s7, [#allocation3]  }
  0x11   :  { %87 = dma.done.wait [#allocation3], 128  }
  0x12   :  { %88 = vsyncadd [#allocation3], 4294967168  ;;  %v21_v0 = vld [vmem:[#allocation2] sm:$0xff]  ;;  %s92_s18 = smov 1   ;;  %s93_s19 = smov [#allocation5]  }
  0x13   :  { %22 = vrot.lane.b32.xlu0 %v21_v0, %s92_s18  ;;  %s31_s20 = sshll.u32 %s93_s19, 4  ;;  %s32_s20 = int_to_ptr.vmem [resolvable:$true] %s31_s20 }
  0x14   :  { %s65_s21 = scalar_lea.vmem %s32_s20, 128  ;;  %p70_p9 = scmp.lt.s32.totalorder %s32_s20, %s32_s20 }
  0x15   :  { %p66_p8 = scmp.ne.s32.totalorder %s32_s20, %s65_s21  ;;  %p71_p10 = scmp.lt.s32.totalorder %s65_s21, %s65_s21 }
  0x17   :  { %p72_p11 = por %p71_p10, %p70_p9 }
  0x19   :  { %p73_p12 = pnand %p72_p11, %p66_p8 }
  0x85   :  { %v23_v1 = vpop.permute.xlu0 %22 }
  0x86   :  { %24 = vst [vmem:[#allocation5] sm:$0xff] %v23_v1 }
  0x87   :  { %76 = shalt.err (!%p73_p12)
}
  0x88   :  { %s77_s0 = scalar_lea.hbm %s129_s1, 128 }
  0x89   :  { %p78_p13 = scmp.ne.s32.totalorder %s129_s1, %s77_s0  ;;  %p81_p0 = scmp.lt.u32.totalorder %s77_s0, %s129_s1 }
  0x8b   :  { %p83_p1 = pnand %p81_p0, %p78_p13 }
  0x8d   :  { %86 = shalt.err (!%p83_p1)
}
  0x8e   :  { %34 = dma.vmem_to_hbm [thread:$0]  %s32_s20, 128, %s129_s1, [#allocation4]  }
  0x8f   :  { %89 = dma.done.wait [#allocation4], 128  }
  0x90   :  { %90 = vsyncadd [#allocation4], 4294967168 }
  0x91   :  { %38 = vsyncpa [#allocation3], 1 }
  0x92   :  { %39 = vsyncpa [#allocation4], 1 }

</bundles_post_ra>
